<compile_context>
chip_gen: v6e
topology: v6e:2x2x1
jax: 0.10.0
libtpu: 0.0.40
codegen_flags: <defaults>
</compile_context>

<pallas_src>
import math

import jax
import jax.numpy as jnp
from jax.experimental import pallas as pl
from jax.experimental.pallas import tpu as pltpu


def _round_up(x, m):
    return -(-x // m) * m


def _vmem_budget_and_limit():
    """Per-generation VMEM numbers: tile-sizing budget + compiler vmem limit."""
    phys = 64 * 1024 * 1024                       # conservative fallback (v7x physical)
    try:
        phys = int(pltpu.get_tpu_info().vmem_capacity_bytes)
    except Exception:                             # query unavailable -> stay conservative
        pass
    limit = min(phys * 3 // 4, 96 * 1024 * 1024)  # ~96 MiB on v5e/v6e, ~48 MiB on v7x
    budget = limit * 3 // 4                       # headroom for compiler temporaries
    return budget, limit


def _resident_spec(block_shape, index_map):
    """BlockSpec for operands whose block never changes: single-buffer them."""
    try:
        return pl.BlockSpec(block_shape, index_map, pipeline_mode=pl.Buffered(1))
    except Exception:                             # older BlockSpec signature -> default
        return pl.BlockSpec(block_shape, index_map)


def _pick_th(H, W_r, KCIN, COUT_P, K, in_item, out_item, budget_bytes,
             target_pixels=8192):
    """Row-tile height TH (in output image rows) from a VMEM budget."""
    gran = math.lcm(8, max(K - 1, 1))             # sublane + halo-shift divisibility
    halo_rows = max(K - 1, 0) * W_r
    resident = (K * KCIN * COUT_P * in_item       # weights (single-buffered)
                + 2 * COUT_P * 4                  # BN scale + offset
                + 2 * halo_rows * KCIN * in_item  # halo block (double-buffered)
                + halo_rows * KCIN * in_item)     # halo tail of the window scratch
    per_row = W_r * (2 * KCIN * in_item           # main input block (double-buffered)
                     + KCIN * in_item             # window scratch
                     + 2 * COUT_P * out_item      # output block (double-buffered)
                     + 2 * COUT_P * 4)            # f32 accumulator temporaries (headroom)
    th_budget = max((budget_bytes - resident) // per_row, gran) // gran * gran
    th_target = _round_up(max(target_pixels // max(W_r, 1), 1), gran)
    th_cap = _round_up(H, gran)                   # never materialize more rows than needed
    return max(gran, min(th_budget, th_target, th_cap))


def _make_kernel(K, TH, W_r, out_dtype):
    M = TH * W_r                                  # output pixels per grid step
    HALO = (K - 1) * W_r                          # halo pixels (next K-1 image rows)

    def kernel(*refs):
        if HALO:
            xm_ref, xh_ref, w_ref, s_ref, b_ref, o_ref, win_ref = refs
            win_ref[:M] = xm_ref[0]               # cheap VMEM->VMEM copy of main rows
            win_ref[M:] = xh_ref[0]               # append the (K-1)-row halo

            def rows(kh):
                return win_ref[kh * W_r:kh * W_r + M]
        else:                                     # 1x1 conv: no halo, no window scratch
            xm_ref, w_ref, s_ref, b_ref, o_ref = refs

            def rows(kh):
                return xm_ref[0]

        acc = jnp.dot(rows(0), w_ref[0], preferred_element_type=jnp.float32)
        for kh in range(1, K):                    # K static shifted matmuls, f32 accumulate
            acc = acc + jnp.dot(rows(kh), w_ref[kh],
                                preferred_element_type=jnp.float32)
        y = acc * s_ref[...] + b_ref[...]         # folded BatchNorm (eval stats) + conv bias
        o_ref[0] = jnp.maximum(y, 0.0).astype(out_dtype)

    return kernel


def conv2d_block_forward(x_nchw, weight, bias, gamma, beta,
                         running_mean, running_var, eps=1e-5, dropout=0.0,
                         out_dtype=None, mxu_dtype=jnp.bfloat16):
    """Conv2DBlock forward (inference semantics)."""
    N, Cin, H, W = x_nchw.shape
    Cout, Cin_w, K, K2 = weight.shape
    assert Cin_w == Cin and K == K2 and K % 2 == 1, "odd square kernels / stride 1 only"
    pad = (K - 1) // 2
    out_dtype = x_nchw.dtype if out_dtype is None else out_dtype
    in_item = jnp.dtype(mxu_dtype).itemsize
    out_item = jnp.dtype(out_dtype).itemsize

    # ---- static geometry ---------------------------------------------------
    KCIN = K * Cin
    # Lane-dense Cout only when it is cheap; small Cout keeps its native width.
    COUT_P = _round_up(Cout, 128) if Cout >= 64 else Cout
    # Width padded (rarely) so the halo block height (K-1)*W_r is a multiple of 8.
    d = (8 // math.gcd(8, K - 1)) if K > 1 else 1
    W_r = _round_up(W, d)

    budget, vmem_limit = _vmem_budget_and_limit()
    TH = _pick_th(H, W_r, KCIN, COUT_P, K, in_item, out_item, budget)
    num_tiles = -(-H // TH)
    H_in = num_tiles * TH + (K - 1)               # materialized rows incl. conv padding

    # ---- wrapper glue (plain XLA): NCHW->NHWC, pad, width-tap expansion ----
    # Only the width taps are expanded here (~K x input bytes, bf16); height
    # taps are fused in the kernel via the (K-1)-row halo.
    # TODO(synk): fully fuse the width taps too (lane rolls inside the kernel)
    # to drop input traffic another ~K x.
    x = jnp.transpose(x_nchw, (0, 2, 3, 1)).astype(mxu_dtype)        # (N, H, W, Cin)
    x_pad = jnp.pad(x, ((0, 0),
                        (pad, H_in - H - pad),
                        (pad, pad + (W_r - W)),
                        (0, 0)))
    x_wide = jnp.concatenate([x_pad[:, :, kw:kw + W_r, :] for kw in range(K)],
                             axis=-1)                                 # (N, H_in, W_r, K*Cin)
    x_rows = x_wide.reshape(N, H_in * W_r, KCIN)

    # PyTorch weight (Cout, Cin, K, K) -> per-kh matrices (K, K*Cin, Cout)
    w3 = jnp.transpose(weight, (2, 3, 1, 0)).reshape(K, KCIN, Cout).astype(mxu_dtype)

    # Fold eval-mode BatchNorm + conv bias into per-channel scale / offset (f32).
    scale = (gamma / jnp.sqrt(running_var + eps)).astype(jnp.float32)
    offset = (beta + (bias - running_mean) * scale).astype(jnp.float32)
    if COUT_P != Cout:
        w3 = jnp.pad(w3, ((0, 0), (0, 0), (0, COUT_P - Cout)))
        scale = jnp.pad(scale, (0, COUT_P - Cout))
        offset = jnp.pad(offset, (0, COUT_P - Cout))
    scale2 = scale.reshape(1, COUT_P)
    offset2 = offset.reshape(1, COUT_P)

    # ---- pallas_call --------------------------------------------------------
    M_TILE = TH * W_r
    HALO = (K - 1) * W_r
    SHIFT = TH // max(K - 1, 1)                   # halo block-index step (TH % (K-1) == 0)

    in_specs = [pl.BlockSpec((1, M_TILE, KCIN), lambda n, i: (n, i, 0))]
    inputs = [x_rows]
    if HALO:
        in_specs.append(pl.BlockSpec((1, HALO, KCIN),
                                     lambda n, i: (n, (i + 1) * SHIFT, 0)))
        inputs.append(x_rows)                     # second (shifted) view of the same slab
    in_specs += [
        _resident_spec((K, KCIN, COUT_P), lambda n, i: (0, 0, 0)),
        _resident_spec((1, COUT_P), lambda n, i: (0, 0)),
        _resident_spec((1, COUT_P), lambda n, i: (0, 0)),
    ]
    inputs += [w3, scale2, offset2]

    scratch_shapes = [pltpu.VMEM((M_TILE + HALO, KCIN), mxu_dtype)] if HALO else []

    out_rows = pl.pallas_call(
        _make_kernel(K, TH, W_r, out_dtype),
        out_shape=jax.ShapeDtypeStruct((N, H * W_r, COUT_P), out_dtype),
        grid=(N, num_tiles),
        in_specs=in_specs,
        out_specs=pl.BlockSpec((1, M_TILE, COUT_P), lambda n, i: (n, i, 0)),
        scratch_shapes=scratch_shapes,
        compiler_params=pltpu.CompilerParams(
            dimension_semantics=("parallel", "parallel"),
            vmem_limit_bytes=vmem_limit,
        ),
    )(*inputs)

    # TODO(synk): training-mode Dropout (p > 0) and batch-statistics BatchNorm
    # (+ running-stat updates) are not implemented; with dropout=0 / eval mode
    # both are identities here.
    out = out_rows.reshape(N, H, W_r, COUT_P)[:, :, :W, :Cout]
    return jnp.transpose(out, (0, 3, 1, 2))       # back to NCHW


if __name__ == "__main__":
    key = jax.random.PRNGKey(0)
    k1, k2, k3, k4, k5, k6, k7 = jax.random.split(key, 7)

    N, Cin, H, W = 2, 4, 16, 16
    Cout, K = 8, 3

    x = jax.random.normal(k1, (N, Cin, H, W), jnp.float32)
    weight = jax.random.normal(k2, (Cout, Cin, K, K), jnp.float32) * 0.1
    bias = jax.random.normal(k3, (Cout,), jnp.float32) * 0.1
    gamma = 1.0 + jax.random.normal(k4, (Cout,), jnp.float32) * 0.1
    beta = jax.random.normal(k5, (Cout,), jnp.float32) * 0.1
    running_mean = jax.random.normal(k6, (Cout,), jnp.float32) * 0.1
    running_var = jax.random.uniform(k7, (Cout,), jnp.float32, minval=0.5, maxval=1.5)

    out = conv2d_block_forward(x, weight, bias, gamma, beta, running_mean, running_var)
    out = jax.block_until_ready(out)

    # pure-JAX reference (same bf16 MXU-operand cast, f32 accumulation/epilogue)
    ref = jax.lax.conv_general_dilated(
        x.astype(jnp.bfloat16), weight.astype(jnp.bfloat16),
        window_strides=(1, 1), padding="SAME",
        dimension_numbers=("NCHW", "OIHW", "NCHW"),
        preferred_element_type=jnp.float32)
    ref = ref + bias.reshape(1, Cout, 1, 1)
    bn_scale = gamma / jnp.sqrt(running_var + 1e-5)
    ref = (ref - running_mean.reshape(1, Cout, 1, 1)) * bn_scale.reshape(1, Cout, 1, 1) \
          + beta.reshape(1, Cout, 1, 1)
    ref = jnp.maximum(ref, 0.0)

    assert out.shape == (N, Cout, H, W)
    assert bool(jnp.all(out >= 0.0))
    assert jnp.allclose(out, ref, atol=1e-2, rtol=1e-2), \
        float(jnp.max(jnp.abs(out - ref)))
    print("KERNEL_OK")
</pallas_src>

<mosaic_0001>
module attributes {stable_mosaic.version = 11 : i64} {
  func.func @kernel(%arg0: i32, %arg1: i32, %arg2: memref<1x256x12xbf16, #tpu.memory_space<vmem>>, %arg3: memref<1x32x12xbf16, #tpu.memory_space<vmem>>, %arg4: memref<3x12x8xbf16, #tpu.memory_space<vmem>>, %arg5: memref<1x8xf32, #tpu.memory_space<vmem>>, %arg6: memref<1x8xf32, #tpu.memory_space<vmem>>, %arg7: memref<1x256x8xf32, #tpu.memory_space<vmem>>, %arg8: memref<288x12xbf16, #tpu.memory_space<vmem>>) attributes {dimension_semantics = [#tpu.dimension_semantics<parallel>, #tpu.dimension_semantics<parallel>], iteration_bounds = array<i64: 2, 1>, scalar_prefetch = 0 : i64, scratch_operands = 1 : i64, tpu.core_type = #tpu.core_type<tc>, window_params = [{transform_indices = @transform_0, window_bounds = array<i64: 1, 256, 12>}, {transform_indices = @transform_1, window_bounds = array<i64: 1, 32, 12>}, {pipeline_mode = #tpu.pipeline_mode<synchronous>, transform_indices = @transform_2, window_bounds = array<i64: 3, 12, 8>}, {pipeline_mode = #tpu.pipeline_mode<synchronous>, transform_indices = @transform_3, window_bounds = array<i64: 1, 8>}, {pipeline_mode = #tpu.pipeline_mode<synchronous>, transform_indices = @transform_4, window_bounds = array<i64: 1, 8>}, {transform_indices = @transform_5, window_bounds = array<i64: 1, 256, 8>}]} {
    %c0 = arith.constant 0 : index
    %c0_0 = arith.constant 0 : index
    %c0_1 = arith.constant 0 : index
    %0 = vector.load %arg2[%c0, %c0_0, %c0_1] : memref<1x256x12xbf16, #tpu.memory_space<vmem>>, vector<1x256x12xbf16>
    %1 = vector.shape_cast %0 : vector<1x256x12xbf16> to vector<256x12xbf16>
    %c0_2 = arith.constant 0 : index
    %c0_3 = arith.constant 0 : index
    %2 = vector.load %arg8[%c0_2, %c0_3] : memref<288x12xbf16, #tpu.memory_space<vmem>>, vector<256x12xbf16>
    tpu.vector_store %arg8[%c0_2, %c0_3], %1 {strides = array<i32>} : memref<288x12xbf16, #tpu.memory_space<vmem>>, vector<256x12xbf16>,
    %c0_4 = arith.constant 0 : index
    %c0_5 = arith.constant 0 : index
    %c0_6 = arith.constant 0 : index
    %3 = vector.load %arg3[%c0_4, %c0_5, %c0_6] : memref<1x32x12xbf16, #tpu.memory_space<vmem>>, vector<1x32x12xbf16>
    %4 = vector.shape_cast %3 : vector<1x32x12xbf16> to vector<32x12xbf16>
    %c256 = arith.constant 256 : index
    %c0_7 = arith.constant 0 : index
    %5 = vector.load %arg8[%c256, %c0_7] : memref<288x12xbf16, #tpu.memory_space<vmem>>, vector<32x12xbf16>
    tpu.vector_store %arg8[%c256, %c0_7], %4 {strides = array<i32>} : memref<288x12xbf16, #tpu.memory_space<vmem>>, vector<32x12xbf16>,
    %c0_8 = arith.constant 0 : index
    %c0_9 = arith.constant 0 : index
    %6 = vector.load %arg8[%c0_8, %c0_9] : memref<288x12xbf16, #tpu.memory_space<vmem>>, vector<256x12xbf16>
    %c0_10 = arith.constant 0 : index
    %c0_11 = arith.constant 0 : index
    %c0_12 = arith.constant 0 : index
    %7 = vector.load %arg4[%c0_10, %c0_11, %c0_12] : memref<3x12x8xbf16, #tpu.memory_space<vmem>>, vector<1x12x8xbf16>
    %8 = vector.shape_cast %7 : vector<1x12x8xbf16> to vector<12x8xbf16>
    %cst = arith.constant dense<0.000000e+00> : vector<256x8xf32>
    %9 = tpu.matmul %6, %8, %cst {dimension_numbers = #tpu.dot_dimension_numbers<[1], [0], [0], [1], [0, 0, 1, 1], [], []>} : vector<256x12xbf16>, vector<12x8xbf16>, vector<256x8xf32> -> vector<256x8xf32>
    %c16 = arith.constant 16 : index
    %c0_13 = arith.constant 0 : index
    %10 = vector.load %arg8[%c16, %c0_13] : memref<288x12xbf16, #tpu.memory_space<vmem>>, vector<256x12xbf16>
    %c1 = arith.constant 1 : index
    %c0_14 = arith.constant 0 : index
    %c0_15 = arith.constant 0 : index
    %11 = vector.load %arg4[%c1, %c0_14, %c0_15] : memref<3x12x8xbf16, #tpu.memory_space<vmem>>, vector<1x12x8xbf16>
    %12 = vector.shape_cast %11 : vector<1x12x8xbf16> to vector<12x8xbf16>
    %cst_16 = arith.constant dense<0.000000e+00> : vector<256x8xf32>
    %13 = tpu.matmul %10, %12, %cst_16 {dimension_numbers = #tpu.dot_dimension_numbers<[1], [0], [0], [1], [0, 0, 1, 1], [], []>} : vector<256x12xbf16>, vector<12x8xbf16>, vector<256x8xf32> -> vector<256x8xf32>
    %14 = arith.addf %9, %13 : vector<256x8xf32>
    %c32 = arith.constant 32 : index
    %c0_17 = arith.constant 0 : index
    %15 = vector.load %arg8[%c32, %c0_17] : memref<288x12xbf16, #tpu.memory_space<vmem>>, vector<256x12xbf16>
    %c2 = arith.constant 2 : index
    %c0_18 = arith.constant 0 : index
    %c0_19 = arith.constant 0 : index
    %16 = vector.load %arg4[%c2, %c0_18, %c0_19] : memref<3x12x8xbf16, #tpu.memory_space<vmem>>, vector<1x12x8xbf16>
    %17 = vector.shape_cast %16 : vector<1x12x8xbf16> to vector<12x8xbf16>
    %cst_20 = arith.constant dense<0.000000e+00> : vector<256x8xf32>
    %18 = tpu.matmul %15, %17, %cst_20 {dimension_numbers = #tpu.dot_dimension_numbers<[1], [0], [0], [1], [0, 0, 1, 1], [], []>} : vector<256x12xbf16>, vector<12x8xbf16>, vector<256x8xf32> -> vector<256x8xf32>
    %19 = arith.addf %14, %18 : vector<256x8xf32>
    %c0_21 = arith.constant 0 : index
    %c0_22 = arith.constant 0 : index
    %20 = vector.load %arg5[%c0_21, %c0_22] : memref<1x8xf32, #tpu.memory_space<vmem>>, vector<1x8xf32>
    %21 = vector.broadcast %20 : vector<1x8xf32> to vector<256x8xf32>
    %22 = arith.mulf %19, %21 : vector<256x8xf32>
    %c0_23 = arith.constant 0 : index
    %c0_24 = arith.constant 0 : index
    %23 = vector.load %arg6[%c0_23, %c0_24] : memref<1x8xf32, #tpu.memory_space<vmem>>, vector<1x8xf32>
    %24 = vector.broadcast %23 : vector<1x8xf32> to vector<256x8xf32>
    %25 = arith.addf %22, %24 : vector<256x8xf32>
    %cst_25 = arith.constant 0.000000e+00 : f32
    %26 = vector.broadcast %cst_25 : f32 to vector<256x8xf32>
    %27 = arith.maximumf %25, %26 : vector<256x8xf32>
    %c0_26 = arith.constant 0 : index
    %c0_27 = arith.constant 0 : index
    %c0_28 = arith.constant 0 : index
    %28 = vector.load %arg7[%c0_26, %c0_27, %c0_28] : memref<1x256x8xf32, #tpu.memory_space<vmem>>, vector<1x256x8xf32>
    %29 = vector.shape_cast %28 : vector<1x256x8xf32> to vector<256x8xf32>
    %30 = vector.shape_cast %27 : vector<256x8xf32> to vector<1x256x8xf32>
    tpu.vector_store %arg7[%c0_26, %c0_27, %c0_28], %30 {strides = array<i32>} : memref<1x256x8xf32, #tpu.memory_space<vmem>>, vector<1x256x8xf32>,
    return
  }
  func.func @transform_0(%arg0: i32, %arg1: i32) -> (i32, i32, i32) {
    %c0_i32 = arith.constant 0 : i32
    %c0_i32_0 = arith.constant 0 : i32
    return %arg0, %arg1, %c0_i32 : i32, i32, i32
  }
  func.func @transform_1(%arg0: i32, %arg1: i32) -> (i32, i32, i32) {
    %c1_i32 = arith.constant 1 : i32
    %0 = arith.addi %arg1, %c1_i32 : i32
    %c8_i32 = arith.constant 8 : i32
    %1 = arith.muli %0, %c8_i32 : i32
    %c0_i32 = arith.constant 0 : i32
    %c0_i32_0 = arith.constant 0 : i32
    return %arg0, %1, %c0_i32 : i32, i32, i32
  }
  func.func @transform_2(%arg0: i32, %arg1: i32) -> (i32, i32, i32) {
    %c0_i32 = arith.constant 0 : i32
    %c0_i32_0 = arith.constant 0 : i32
    %c0_i32_1 = arith.constant 0 : i32
    %c0_i32_2 = arith.constant 0 : i32
    return %c0_i32, %c0_i32_0, %c0_i32_1 : i32, i32, i32
  }
  func.func @transform_3(%arg0: i32, %arg1: i32) -> (i32, i32) {
    %c0_i32 = arith.constant 0 : i32
    %c0_i32_0 = arith.constant 0 : i32
    %c0_i32_1 = arith.constant 0 : i32
    return %c0_i32, %c0_i32_0 : i32, i32
  }
  func.func @transform_4(%arg0: i32, %arg1: i32) -> (i32, i32) {
    %c0_i32 = arith.constant 0 : i32
    %c0_i32_0 = arith.constant 0 : i32
    %c0_i32_1 = arith.constant 0 : i32
    return %c0_i32, %c0_i32_0 : i32, i32
  }
  func.func @transform_5(%arg0: i32, %arg1: i32) -> (i32, i32, i32) {
    %c0_i32 = arith.constant 0 : i32
    %c0_i32_0 = arith.constant 0 : i32
    return %arg0, %arg1, %c0_i32 : i32, i32, i32
  }
}

</mosaic_0001>

<bundles_post_ra>
// kernel: tpu_custom_call.1
= control target key start
LH: loop header
LB: loop body
LE: loop exit
PB: predicated region body
PF: predicated region fallthrough
CT: control target
= control target key end

     0   :  { %s1915_s18 = smov 0   ;;  %s1917_s19 = smov 0   ;;  %s2353_s0 = inlined_call_operand.vmem [shape: bf16[2,288,12], index: 0, kind: input, shape index: {}]   ;;  %s2354_s1 = inlined_call_operand.vmem [shape: bf16[2,288,12], index: 1, kind: input, shape index: {}]   ;;  %s2355_s2 = inlined_call_operand.vmem [shape: bf16[3,12,8], index: 2, kind: input, shape index: {}]   ;;  %s2356_s3 = inlined_call_operand.vmem [shape: f32[1,8], index: 3, kind: input, shape index: {}]   ;;  %s2357_s4 = inlined_call_operand.vmem [shape: f32[1,8], index: 4, kind: input, shape index: {}]   ;;  %s2358_s5 = inlined_call_operand.vmem [shape: f32[2,256,8], index: 5, kind: output, shape index: {}]  }
   0x1   :  { %s1919_s20 = smov 0  }
   0x2 LB: > { %s27_s21 = sadd.s32 1, %s1879_s19  ;;  %p1539_p0 = scmp.ge.s32.totalorder %s1883_s20, 1  ;;  %s1883_s20 = sphi %s1919_s20, %s15_s20   ;;  %s1879_s19 = sphi %s1917_s19, %s2360_s19   ;;  %s1875_s18 = sphi %s1915_s18, %s2359_s18  }
   0x3   : > { %p29_p1 = scmp.ge.s32.totalorder %s27_s21, 2  ;;  %p241_p2 = scmp.lt.s32.totalorder %s1883_s20, 3 }
   0x5   : > { %s2362_s21 = smov (%p29_p1, %s27_s21), 0  ;;  %p242_p3 = pnand %p1539_p0, %p241_p2 }
   0x6   : > { %p297_p4 = scmp.lt.s32.totalorder (!%p242_p3), %s1875_s18, 1 }
   0x7   : > { %245 = sbr.rel (%p242_p3) target bundleno = 332 (0x14c), region = 40 }
   0xc   : > { %v1825_v0 = vld [vmem:[%s2355_s2 + $0x8] sm:$0x3f]   ;;  %vm581_vm0 = vcmask 1045504   ;;  %v1942_v2 = vld [vmem:[%s2355_s2] sm:$0x3f]   ;;  %s2364_s18 = smov (!%p297_p4, %s1875_s18), 1 }
   0xd   : > { %1795 = vmatprep.subr.msk.bf16.mxu1 %vm581_vm0, %v1825_v0  ;;  %1794 = vmatprep.subr.msk.bf16.mxu0 %vm581_vm0, %v1825_v0  ;;  %v583_v1 = vsel %vm581_vm0, %v1825_v0, 0  ;;  %v1831_v3 = vld [vmem:[%s2355_s2 + $0x10] sm:$0x3f]   ;;  %s1798_s28 = smul.u32 144, %s2364_s18  ;;  %vm367_vm1 = vcmask 93184   ;;  %vm532_vm2 = vcmask 97280  }
   0xe   : > { %1793 = vmatpush3.bf16.msra.mxu1 %v583_v1  ;;  %1691 = vmatpush3.bf16.msra.mxu0 %v583_v1  ;;  %v1092_v31 = vsel %vm581_vm0, %v1831_v3, 0  ;;  %v760_v33 = vsel %vm581_vm0, %v1942_v2, 0  ;;  %s1638_s15 = sshll.u32 %s2364_s18, 8  ;;  %vm1397_vm3 = vcmask 64512  }
   0xf   : > { %1796 = vmatprep.subr.msk.bf16.mxu1 %vm581_vm0, %v1942_v2  ;;  %1797 = vmatprep.subr.msk.bf16.mxu0 %vm581_vm0, %v1831_v3  ;;  %s1958_s6 = scalar_lea.vmem %s2353_s0, %s1798_s28  ;;  %s1637_s7 = sadd.s32 128, %s1798_s28 }
  0x10   : > { %v337_v4 = vld [vmem:[%s1958_s6 + $0x8] sm:$0xf]  ;;  %v338_v5 = vld [vmem:[%s1958_s6 + $0xc] sm:$0xf]  ;;  %v339_v8 = vld [vmem:[%s1958_s6 + $0x10] sm:$0xf]  ;;  %s2044_s10 = scalar_lea.vmem %s2354_s1, %s1637_s7  ;;  %s2191_s22 = scalar_lea.vmem %s2358_s5, %s1638_s15 }
  0x11   : > { %v353_v6 = vld [vmem:[%s1958_s6 + $0x48] sm:$0xf]  ;;  %370 = vst.msk [vmem:[#allocation2 + $0x8] sm:$0xf] %vm367_vm1, %v337_v4  ;;  %371 = vst.msk [vmem:[#allocation2 + $0xc] sm:$0xf] %vm367_vm1, %v338_v5 }
  0x12   : > { %v354_v7 = vld [vmem:[%s1958_s6 + $0x4c] sm:$0xf]  ;;  %386 = vst.msk [vmem:[#allocation2 + $0x48] sm:$0xf] %vm367_vm1, %v353_v6  ;;  %v340_v9 = vld [vmem:[%s1958_s6 + $0x14] sm:$0xf] }
  0x13   : > { %387 = vst.msk [vmem:[#allocation2 + $0x4c] sm:$0xf] %vm367_vm1, %v354_v7  ;;  %372 = vst.msk [vmem:[#allocation2 + $0x10] sm:$0xf] %vm367_vm1, %v339_v8  ;;  %v355_v10 = vld [vmem:[%s1958_s6 + $0x50] sm:$0xf] }
  0x14   : > { %373 = vst.msk [vmem:[#allocation2 + $0x14] sm:$0xf] %vm367_vm1, %v340_v9  ;;  %v356_v11 = vld [vmem:[%s1958_s6 + $0x54] sm:$0xf]  ;;  %v341_v12 = vld [vmem:[%s1958_s6 + $0x18] sm:$0xf] }
  0x15   : > { %388 = vst.msk [vmem:[#allocation2 + $0x50] sm:$0xf] %vm367_vm1, %v355_v10  ;;  %389 = vst.msk [vmem:[#allocation2 + $0x54] sm:$0xf] %vm367_vm1, %v356_v11  ;;  %v342_v13 = vld [vmem:[%s1958_s6 + $0x1c] sm:$0xf] }
  0x16   : > { %374 = vst.msk [vmem:[#allocation2 + $0x18] sm:$0xf] %vm367_vm1, %v341_v12  ;;  %v357_v14 = vld [vmem:[%s1958_s6 + $0x58] sm:$0xf]  ;;  %v358_v15 = vld [vmem:[%s1958_s6 + $0x5c] sm:$0xf] }
  0x17   : > { %375 = vst.msk [vmem:[#allocation2 + $0x1c] sm:$0xf] %vm367_vm1, %v342_v13  ;;  %390 = vst.msk [vmem:[#allocation2 + $0x58] sm:$0xf] %vm367_vm1, %v357_v14  ;;  %v343_v16 = vld [vmem:[%s1958_s6 + $0x20] sm:$0xf] }
  0x18   : > { %391 = vst.msk [vmem:[#allocation2 + $0x5c] sm:$0xf] %vm367_vm1, %v358_v15  ;;  %v344_v17 = vld [vmem:[%s1958_s6 + $0x24] sm:$0xf]  ;;  %v359_v18 = vld [vmem:[%s1958_s6 + $0x60] sm:$0xf] }
  0x19   : > { %376 = vst.msk [vmem:[#allocation2 + $0x20] sm:$0xf] %vm367_vm1, %v343_v16  ;;  %377 = vst.msk [vmem:[#allocation2 + $0x24] sm:$0xf] %vm367_vm1, %v344_v17  ;;  %v360_v19 = vld [vmem:[%s1958_s6 + $0x64] sm:$0xf] }
  0x1a   : > { %392 = vst.msk [vmem:[#allocation2 + $0x60] sm:$0xf] %vm367_vm1, %v359_v18  ;;  %v345_v20 = vld [vmem:[%s1958_s6 + $0x28] sm:$0xf]  ;;  %v346_v21 = vld [vmem:[%s1958_s6 + $0x2c] sm:$0xf] }
  0x1b   : > { %393 = vst.msk [vmem:[#allocation2 + $0x64] sm:$0xf] %vm367_vm1, %v360_v19  ;;  %378 = vst.msk [vmem:[#allocation2 + $0x28] sm:$0xf] %vm367_vm1, %v345_v20  ;;  %v361_v22 = vld [vmem:[%s1958_s6 + $0x68] sm:$0xf] }
  0x1c   : > { %379 = vst.msk [vmem:[#allocation2 + $0x2c] sm:$0xf] %vm367_vm1, %v346_v21  ;;  %v362_v23 = vld [vmem:[%s1958_s6 + $0x6c] sm:$0xf]  ;;  %v347_v24 = vld [vmem:[%s1958_s6 + $0x30] sm:$0xf] }
  0x1d   : > { %394 = vst.msk [vmem:[#allocation2 + $0x68] sm:$0xf] %vm367_vm1, %v361_v22  ;;  %395 = vst.msk [vmem:[#allocation2 + $0x6c] sm:$0xf] %vm367_vm1, %v362_v23  ;;  %v348_v25 = vld [vmem:[%s1958_s6 + $0x34] sm:$0xf] }
  0x1e   : > { %380 = vst.msk [vmem:[#allocation2 + $0x30] sm:$0xf] %vm367_vm1, %v347_v24  ;;  %v363_v26 = vld [vmem:[%s1958_s6 + $0x70] sm:$0xf]  ;;  %v364_v27 = vld [vmem:[%s1958_s6 + $0x74] sm:$0xf] }
  0x1f   : > { %v2005_v28 = vld [vmem:[#allocation2 + $0x8] sm:$0xff]   ;;  %381 = vst.msk [vmem:[#allocation2 + $0x34] sm:$0xf] %vm367_vm1, %v348_v25  ;;  %396 = vst.msk [vmem:[#allocation2 + $0x70] sm:$0xf] %vm367_vm1, %v363_v26  ;;  %v2014_v30 = vld [vmem:[#allocation2 + $0x10] sm:$0xff]  }
  0x20   : > { %397 = vst.msk [vmem:[#allocation2 + $0x74] sm:$0xf] %vm367_vm1, %v364_v27  ;;  %v2010_v29 = vld [vmem:[#allocation2 + $0x48] sm:$0xff]   ;;  %1692 = vmatprep.mubr.msk.bf16.mxu0 %vm532_vm2, %v2005_v28  ;;  %v2019_v32 = vld [vmem:[#allocation2 + $0x50] sm:$0xff]   ;;  %v2025_v34 = vld [vmem:[#allocation2 + $0x18] sm:$0xff]  }
  0x21   : > { %1708 = vmatprep.mubr.msk.bf16.mxu1 %vm532_vm2, %v2010_v29  ;;  %1693 = vmatmul.mubr.msk.bf16.vlgmr.msra.gmra.mxu0 %vm532_vm2, %v2014_v30  ;;  %v2029_v35 = vld [vmem:[#allocation2 + $0x58] sm:$0xff]   ;;  %v1834_v36 = vld [vmem:[#allocation2 + $0x20] sm:$0xff]   ;;  %v1845_v54 = vld [vmem:[#allocation2 + $0x10] sm:$0xff]  }
  0x22   : > { %1709 = vmatmul.mubr.msk.bf16.vlgmr.msra.gmra.mxu1 %vm532_vm2, %v2019_v32  ;;  %1759 = vmatpush3.bf16.msra.mxu0 %v1092_v31  ;;  %v2035_v37 = vld [vmem:[#allocation2 + $0x60] sm:$0xff]   ;;  %v349_v40 = vld [vmem:[%s1958_s6 + $0x38] sm:$0xf]  ;;  %v350_v41 = vld [vmem:[%s1958_s6 + $0x3c] sm:$0xf] }
  0x23   : > { %1725 = vmatpush3.bf16.msra.mxu1 %v760_v33  ;;  %1696 = vmatprep.mubr.msk.bf16.mxu0 %vm532_vm2, %v2025_v34  ;;  %v1836_v38 = vld [vmem:[#allocation2 + $0x28] sm:$0xff]   ;;  %v365_v42 = vld [vmem:[%s1958_s6 + $0x78] sm:$0xf]  ;;  %382 = vst.msk [vmem:[#allocation2 + $0x38] sm:$0xf] %vm367_vm1, %v349_v40  ;;  %v1847_v59 = vld [vmem:[#allocation2 + $0x20] sm:$0xff]  }
  0x24   : > { %1712 = vmatprep.mubr.msk.bf16.mxu1 %vm532_vm2, %v2029_v35  ;;  %v2039_v39 = vld [vmem:[#allocation2 + $0x68] sm:$0xff]   ;;  %383 = vst.msk [vmem:[#allocation2 + $0x3c] sm:$0xf] %vm367_vm1, %v350_v41  ;;  %v366_v43 = vld [vmem:[%s1958_s6 + $0x7c] sm:$0xf]  ;;  %v1853_v3 = vld [vmem:[#allocation2 + $0x50] sm:$0xff]  }
  0x25   : > { %398 = vst.msk [vmem:[#allocation2 + $0x78] sm:$0xf] %vm367_vm1, %v365_v42  ;;  %v351_v44 = vld [vmem:[%s1958_s6 + $0x40] sm:$0xf]  ;;  %v352_v45 = vld [vmem:[%s1958_s6 + $0x44] sm:$0xf] }
  0x26   : > { %399 = vst.msk [vmem:[#allocation2 + $0x7c] sm:$0xf] %vm367_vm1, %v366_v43  ;;  %384 = vst.msk [vmem:[#allocation2 + $0x40] sm:$0xf] %vm367_vm1, %v351_v44  ;;  %v400_v46 = vld [vmem:[%s2044_s10] sm:$0xf] }
  0x27   : > { %385 = vst.msk [vmem:[#allocation2 + $0x44] sm:$0xf] %vm367_vm1, %v352_v45  ;;  %v401_v47 = vld [vmem:[%s2044_s10 + $0x4] sm:$0xf]  ;;  %v335_v48 = vld [vmem:[%s1958_s6] sm:$0xf] }
  0x28   : > { %404 = vst.msk [vmem:[#allocation2 + $0x80] sm:$0xf] %vm367_vm1, %v400_v46  ;;  %405 = vst.msk [vmem:[#allocation2 + $0x84] sm:$0xf] %vm367_vm1, %v401_v47  ;;  %v336_v49 = vld [vmem:[%s1958_s6 + $0x4] sm:$0xf] }
  0x29   : > { %1697 = vmatmul.mubr.msk.bf16.gmra.mxu0 %vm532_vm2, %v1834_v36  ;;  %368 = vst.msk [vmem:[#allocation2] sm:$0xf] %vm367_vm1, %v335_v48  ;;  %v1838_v50 = vld [vmem:[#allocation2 + $0x30] sm:$0xff]   ;;  %369 = vst.msk [vmem:[#allocation2 + $0x4] sm:$0xf] %vm367_vm1, %v336_v49  ;;  %v1846_v58 = vld [vmem:[#allocation2 + $0x18] sm:$0xff]  }
  0x2a   : > { %1713 = vmatmul.mubr.msk.bf16.gmra.mxu1 %vm532_vm2, %v2035_v37  ;;  %1700 = vmatprep.mubr.msk.bf16.mxu0 %vm532_vm2, %v1836_v38  ;;  %v1839_v51 = vld [vmem:[#allocation2 + $0x70] sm:$0xff]   ;;  %v402_v60 = vld [vmem:[%s2044_s10 + $0x8] sm:$0xf]  ;;  %v403_v61 = vld [vmem:[%s2044_s10 + $0xc] sm:$0xf] }
  0x2b   : > { %1716 = vmatprep.mubr.msk.bf16.mxu1 %vm532_vm2, %v2039_v39  ;;  %v1840_v52 = vld [vmem:[#allocation2 + $0x38] sm:$0xff]   ;;  %406 = vst.msk [vmem:[#allocation2 + $0x88] sm:$0xf] %vm367_vm1, %v402_v60  ;;  %407 = vst.msk [vmem:[#allocation2 + $0x8c] sm:$0xf] %vm367_vm1, %v403_v61  ;;  %v1848_v62 = vld [vmem:[#allocation2 + $0x28] sm:$0xff]  }
  0x2c   : > { %v1849_v63 = vld [vmem:[#allocation2 + $0x30] sm:$0xff]   ;;  %v1850_v0 = vld [vmem:[#allocation2 + $0x38] sm:$0xff]   ;;  %v1852_v2 = vld [vmem:[#allocation2 + $0x48] sm:$0xff]  }
  0x2d   : > { %v1841_v53 = vld [vmem:[#allocation2 + $0x78] sm:$0xff]   ;;  %v1855_v5 = vld [vmem:[#allocation2 + $0x60] sm:$0xff]   ;;  %v1856_v6 = vld [vmem:[#allocation2 + $0x68] sm:$0xff]  }
  0x2e   : > { %v1842_v55 = vld [vmem:[#allocation2 + $0x40] sm:$0xff]   ;;  %v1854_v4 = vld [vmem:[#allocation2 + $0x58] sm:$0xff]   ;;  %v1857_v7 = vld [vmem:[#allocation2 + $0x70] sm:$0xff]  }
  0x2f   : > { %v1843_v56 = vld [vmem:[#allocation2 + $0x80] sm:$0xff]   ;;  %v1858_v8 = vld [vmem:[#allocation2 + $0x78] sm:$0xff]  }
  0x30   : > { %v1844_v57 = vld [vmem:[#allocation2] sm:$0xff]  }
  0x31   : > { %1701 = vmatmul.mubr.msk.bf16.gmra.mxu0 %vm532_vm2, %v1838_v50  ;;  %v1851_v1 = vld [vmem:[#allocation2 + $0x40] sm:$0xff]  }
  0x32   : > { %1717 = vmatmul.mubr.msk.bf16.gmra.mxu1 %vm532_vm2, %v1839_v51  ;;  %1704 = vmatprep.mubr.msk.bf16.mxu0 %vm532_vm2, %v1840_v52  ;;  %v1859_v9 = vld [vmem:[#allocation2 + $0x80] sm:$0xff]   ;;  %v1860_v10 = vld [vmem:[#allocation2 + $0x88] sm:$0xff]  }
  0x33   : > { %1720 = vmatprep.mubr.msk.bf16.mxu1 %vm532_vm2, %v1841_v53  ;;  %v2177_v47 = vld [vmem:[%s2356_s3] ss:$0 sm:$0xff] }
  0x39   : > { %1705 = vmatmul.mubr.msk.bf16.gmra.mxu0 %vm532_vm2, %v1842_v55 }
  0x3a   : > { %1721 = vmatmul.mubr.msk.bf16.gmra.mxu1 %vm532_vm2, %v1843_v56  ;;  %1760 = vmatprep.mubr.msk.bf16.mxu0 %vm532_vm2, %v1845_v54 }
  0x3b   : > { %1726 = vmatprep.mubr.msk.bf16.mxu1 %vm532_vm2, %v1844_v57 }
  0x41   : > { %1761 = vmatmul.mubr.msk.bf16.vlgmr.msra.gmra.mxu0 %vm532_vm2, %v1846_v58 }
  0x42   : > { %1727 = vmatmul.mubr.msk.bf16.vlgmr.msra.gmra.mxu1 %vm532_vm2, %v2005_v28  ;;  %1764 = vmatprep.mubr.msk.bf16.mxu0 %vm532_vm2, %v1847_v59 }
  0x43   : > { %1730 = vmatprep.mubr.msk.bf16.mxu1 %vm532_vm2, %v2014_v30 }
  0x49   : > { %1765 = vmatmul.mubr.msk.bf16.gmra.mxu0 %vm532_vm2, %v1848_v62 }
  0x4a   : > { %1731 = vmatmul.mubr.msk.bf16.gmra.mxu1 %vm532_vm2, %v2025_v34  ;;  %1768 = vmatprep.mubr.msk.bf16.mxu0 %vm532_vm2, %v1849_v63 }
  0x4b   : > { %1734 = vmatprep.mubr.msk.bf16.mxu1 %vm532_vm2, %v1834_v36 }
  0x51   : > { %1769 = vmatmul.mubr.msk.bf16.gmra.mxu0 %vm532_vm2, %v1850_v0 }
  0x52   : > { %1735 = vmatmul.mubr.msk.bf16.gmra.mxu1 %vm532_vm2, %v1836_v38  ;;  %1772 = vmatprep.mubr.msk.bf16.mxu0 %vm532_vm2, %v1851_v1 }
  0x53   : > { %1738 = vmatprep.mubr.msk.bf16.mxu1 %vm532_vm2, %v1838_v50 }
  0x59   : > { %1773 = vmatmul.mubr.msk.bf16.gmra.mxu0 %vm532_vm2, %v1852_v2 }
  0x5a   : > { %1739 = vmatmul.mubr.msk.bf16.gmra.mxu1 %vm532_vm2, %v1840_v52  ;;  %1776 = vmatprep.mubr.msk.bf16.mxu0 %vm532_vm2, %v1853_v3  ;;  %v2182_v52 = vld [vmem:[%s2357_s4] ss:$0 sm:$0xff] }
  0x5b   : > { %1742 = vmatprep.mubr.msk.bf16.mxu1 %vm532_vm2, %v1842_v55 }
  0x61   : > { %1777 = vmatmul.mubr.msk.bf16.gmra.mxu0 %vm532_vm2, %v1854_v4 }
  0x62   : > { %1743 = vmatmul.mubr.msk.bf16.gmra.mxu1 %vm532_vm2, %v2010_v29  ;;  %1780 = vmatprep.mubr.msk.bf16.mxu0 %vm532_vm2, %v1855_v5 }
  0x63   : > { %1746 = vmatprep.mubr.msk.bf16.mxu1 %vm532_vm2, %v2019_v32 }
  0x69   : > { %1781 = vmatmul.mubr.msk.bf16.gmra.mxu0 %vm532_vm2, %v1856_v6 }
  0x6a   : > { %1747 = vmatmul.mubr.msk.bf16.gmra.mxu1 %vm532_vm2, %v2029_v35  ;;  %1784 = vmatprep.mubr.msk.bf16.mxu0 %vm532_vm2, %v1857_v7 }
  0x6b   : > { %1750 = vmatprep.mubr.msk.bf16.mxu1 %vm532_vm2, %v2035_v37 }
  0x71   : > { %1785 = vmatmul.mubr.msk.bf16.gmra.mxu0 %vm532_vm2, %v1858_v8 }
  0x72   : > { %1751 = vmatmul.mubr.msk.bf16.gmra.mxu1 %vm532_vm2, %v2039_v39  ;;  %1788 = vmatprep.mubr.msk.bf16.mxu0 %vm532_vm2, %v1859_v9 }
  0x73   : > { %1754 = vmatprep.mubr.msk.bf16.mxu1 %vm532_vm2, %v1839_v51 }
  0x79   : > { %1789 = vmatmul.mubr.msk.bf16.gmra.mxu0 %vm532_vm2, %v1860_v10 }
  0x7a   : > { %1755 = vmatmul.mubr.msk.bf16.gmra.mxu1 %vm532_vm2, %v1841_v53 }
  0xe1   : > { %v1694_v11 = vpop.f32.mrf.mxu0 }
  0xe2   : > { %v2122_v12 = vpop.f32.mrf.mxu1 }
  0xe3   : > { %v619_v13 = vpop.f32.mrf.mxu0 }
  0xe4   : > { %v2124_v14 = vpop.f32.mrf.mxu1 }
  0xe5   : > { %v1695_v15 = vpop.f32.mrf.mxu0 }
  0xe6   : > { %v2126_v16 = vpop.f32.mrf.mxu1 }
  0xe7   : > { %v622_v17 = vpop.f32.mrf.mxu0 }
  0xe8   : > { %v2128_v18 = vpop.f32.mrf.mxu1 }
  0xe9   : > { %v1698_v19 = vpop.f32.mrf.mxu0 }
  0xea   : > { %v2130_v20 = vpop.f32.mrf.mxu1 }
  0xeb   : > { %v635_v21 = vpop.f32.mrf.mxu0 }
  0xec   : > { %v2132_v22 = vpop.f32.mrf.mxu1 }
  0xed   : > { %v2134_v23 = vpop.f32.mrf.mxu0 }
  0xee   : > { %v2136_v24 = vpop.f32.mrf.mxu1 }
  0xef   : > { %v2138_v25 = vpop.f32.mrf.mxu0 }
  0xf0   : > { %v2140_v26 = vpop.f32.mrf.mxu1 }
  0xf1   : > { %v2142_v27 = vpop.f32.mrf.mxu0 }
  0xf2   : > { %v2144_v28 = vpop.f32.mrf.mxu1 }
  0xf3   : > { %v2146_v29 = vpop.f32.mrf.mxu0 }
  0xf4   : > { %v2148_v30 = vpop.f32.mrf.mxu1 }
  0xf5   : > { %v2150_v31 = vpop.f32.mrf.mxu0 }
  0xf6   : > { %v2152_v32 = vpop.f32.mrf.mxu1 }
  0xf7   : > { %v2154_v33 = vpop.f32.mrf.mxu0 }
  0xf8   : > { %v2156_v34 = vpop.f32.mrf.mxu1 }
  0xf9   : > { %v2158_v35 = vpop.f32.mrf.mxu0 }
  0xfa   : > { %v2160_v36 = vpop.f32.mrf.mxu1 }
  0xfb   : > { %v2162_v37 = vpop.f32.mrf.mxu0 }
  0xfc   : > { %v2164_v38 = vpop.f32.mrf.mxu1 }
  0xfd   : > { %v2166_v39 = vpop.f32.mrf.mxu0 }
  0xfe   : > { %v2168_v40 = vpop.f32.mrf.mxu1 }
  0xff   : > { %v2170_v41 = vpop.f32.mrf.mxu0 }
 0x100   : > { %v2172_v42 = vpop.f32.mrf.mxu1 }
 0x101   : > { %v1762_v43 = vpop.f32.mrf.mxu0 }
 0x102   : > { %v1728_v44 = vpop.f32.mrf.mxu1 }
 0x103   : > { %v805_v45 = vadd.f32 %v1728_v44, %v1694_v11  ;;  %v1128_v46 = vpop.f32.mrf.mxu0 }
 0x104   : > { %v796_v48 = vpop.f32.mrf.mxu1 }
 0x105   : > { %v1257_v49 = vadd.f32 %v1762_v43, %v805_v45  ;;  %v797_v50 = vadd.f32 %v796_v48, %v619_v13  ;;  %v1763_v51 = vpop.f32.mrf.mxu0 }
 0x106   : > { %v1729_v53 = vpop.f32.mrf.mxu1 }
 0x107   : > { %v1296_v54 = vmul.f32 %v2177_v47, %v1257_v49  ;;  %v1255_v55 = vadd.f32 %v1128_v46, %v797_v50  ;;  %v808_v56 = vadd.f32 %v1729_v53, %v1695_v15  ;;  %v1131_v57 = vpop.f32.mrf.mxu0 }
 0x108   : > { %v799_v58 = vpop.f32.mrf.mxu1 }
 0x109   : > { %v1335_v59 = vadd.f32 %v2182_v52, %v1296_v54  ;;  %v1294_v60 = vmul.f32 %v2177_v47, %v1255_v55  ;;  %v1258_v61 = vadd.f32 %v1763_v51, %v808_v56  ;;  %v800_v62 = vadd.f32 %v799_v58, %v622_v17  ;;  %v1766_v63 = vpop.f32.mrf.mxu0 }
 0x10a   : > { %v1732_v0 = vpop.f32.mrf.mxu1 }
 0x10b   : > { %v1367_v1 = vmax.f32 %v1335_v59, 0.0  ;;  %v1333_v2 = vadd.f32 %v2182_v52, %v1294_v60  ;;  %v1297_v3 = vmul.f32 %v2177_v47, %v1258_v61  ;;  %v1256_v4 = vadd.f32 %v1131_v57, %v800_v62  ;;  %v1144_v5 = vpop.f32.mrf.mxu0 }
 0x10c   : > { %v821_v6 = vadd.f32 %v1732_v0, %v1698_v19  ;;  %v812_v7 = vpop.f32.mrf.mxu1 }
 0x10d   : > { %1400 = vst.msk [vmem:[%s2191_s22 + $0x10] sm:$0xff] %vm1397_vm3, %v1367_v1  ;;  %v1365_v8 = vmax.f32 %v1333_v2, 0.0  ;;  %v1336_v9 = vadd.f32 %v2182_v52, %v1297_v3  ;;  %v1295_v10 = vmul.f32 %v2177_v47, %v1256_v4  ;;  %v813_v11 = vadd.f32 %v812_v7, %v635_v21  ;;  %v1767_v13 = vpop.f32.mrf.mxu0 }
 0x10e   : > { %v1261_v15 = vadd.f32 %v1766_v63, %v821_v6  ;;  %v1733_v17 = vpop.f32.mrf.mxu1 }
 0x10f   : > { %1398 = vst.msk [vmem:[%s2191_s22] sm:$0xff] %vm1397_vm3, %v1365_v8  ;;  %v1368_v43 = vmax.f32 %v1336_v9, 0.0  ;;  %v1334_v44 = vadd.f32 %v2182_v52, %v1295_v10  ;;  %v1259_v19 = vadd.f32 %v1144_v5, %v813_v11  ;;  %v824_v45 = vadd.f32 %v1733_v17, %v2134_v23  ;;  %v1147_v46 = vpop.f32.mrf.mxu0 }
 0x110   : > { %v1300_v48 = vmul.f32 %v2177_v47, %v1261_v15  ;;  %v815_v49 = vpop.f32.mrf.mxu1 }
 0x111   : > { %1401 = vst.msk [vmem:[%s2191_s22 + $0x18] sm:$0xff] %vm1397_vm3, %v1368_v43  ;;  %v1366_v50 = vmax.f32 %v1334_v44, 0.0  ;;  %v1298_v21 = vmul.f32 %v2177_v47, %v1259_v19  ;;  %v1262_v51 = vadd.f32 %v1767_v13, %v824_v45  ;;  %v816_v53 = vadd.f32 %v815_v49, %v2138_v25  ;;  %v1770_v54 = vpop.f32.mrf.mxu0 }
 0x112   : > { %v1339_v55 = vadd.f32 %v2182_v52, %v1300_v48  ;;  %v1736_v56 = vpop.f32.mrf.mxu1 }
 0x113   : > { %1399 = vst.msk [vmem:[%s2191_s22 + $0x8] sm:$0xff] %vm1397_vm3, %v1366_v50  ;;  %v1337_v23 = vadd.f32 %v2182_v52, %v1298_v21  ;;  %v1301_v57 = vmul.f32 %v2177_v47, %v1262_v51  ;;  %v1260_v58 = vadd.f32 %v1147_v46, %v816_v53  ;;  %v837_v59 = vadd.f32 %v1736_v56, %v2142_v27  ;;  %v1160_v60 = vpop.f32.mrf.mxu0 }
 0x114   : > { %v1371_v61 = vmax.f32 %v1339_v55, 0.0  ;;  %v828_v62 = vpop.f32.mrf.mxu1 }
 0x115   : > { %v1369_v63 = vmax.f32 %v1337_v23, 0.0  ;;  %v1340_v25 = vadd.f32 %v2182_v52, %v1301_v57  ;;  %v1299_v0 = vmul.f32 %v2177_v47, %v1260_v58  ;;  %v1265_v1 = vadd.f32 %v1770_v54, %v837_v59  ;;  %v1771_v2 = vpop.f32.mrf.mxu0 }
 0x116   : > { %1404 = vst.msk [vmem:[%s2191_s22 + $0x30] sm:$0xff] %vm1397_vm3, %v1371_v61  ;;  %v829_v3 = vadd.f32 %v828_v62, %v2146_v29  ;;  %v1737_v4 = vpop.f32.mrf.mxu1 }
 0x117   : > { %1402 = vst.msk [vmem:[%s2191_s22 + $0x20] sm:$0xff] %vm1397_vm3, %v1369_v63  ;;  %v1372_v27 = vmax.f32 %v1340_v25, 0.0  ;;  %v1338_v5 = vadd.f32 %v2182_v52, %v1299_v0  ;;  %v1304_v6 = vmul.f32 %v2177_v47, %v1265_v1  ;;  %v840_v7 = vadd.f32 %v1737_v4, %v2150_v31  ;;  %v1163_v8 = vpop.f32.mrf.mxu0 }
 0x118   : > { %v1263_v9 = vadd.f32 %v1160_v60, %v829_v3  ;;  %v831_v10 = vpop.f32.mrf.mxu1 }
 0x119   : > { %1405 = vst.msk [vmem:[%s2191_s22 + $0x38] sm:$0xff] %vm1397_vm3, %v1372_v27  ;;  %v1370_v11 = vmax.f32 %v1338_v5, 0.0  ;;  %v1343_v29 = vadd.f32 %v2182_v52, %v1304_v6  ;;  %v1266_v13 = vadd.f32 %v1771_v2, %v840_v7  ;;  %v832_v15 = vadd.f32 %v831_v10, %v2154_v33  ;;  %v1774_v17 = vpop.f32.mrf.mxu0 }
 0x11a   : > { %v1302_v43 = vmul.f32 %v2177_v47, %v1263_v9  ;;  %v1740_v44 = vpop.f32.mrf.mxu1 }
 0x11b   : > { %1403 = vst.msk [vmem:[%s2191_s22 + $0x28] sm:$0xff] %vm1397_vm3, %v1370_v11  ;;  %v1375_v19 = vmax.f32 %v1343_v29, 0.0  ;;  %v1305_v31 = vmul.f32 %v2177_v47, %v1266_v13  ;;  %v1264_v45 = vadd.f32 %v1163_v8, %v832_v15  ;;  %v853_v46 = vadd.f32 %v1740_v44, %v2158_v35  ;;  %v1176_v48 = vpop.f32.mrf.mxu0 }
 0x11c   : > { %v1341_v49 = vadd.f32 %v2182_v52, %v1302_v43  ;;  %v844_v50 = vpop.f32.mrf.mxu1 }
 0x11d   : > { %1408 = vst.msk [vmem:[%s2191_s22 + $0x50] sm:$0xff] %vm1397_vm3, %v1375_v19  ;;  %v1344_v33 = vadd.f32 %v2182_v52, %v1305_v31  ;;  %v1303_v21 = vmul.f32 %v2177_v47, %v1264_v45  ;;  %v1269_v51 = vadd.f32 %v1774_v17, %v853_v46  ;;  %v845_v53 = vadd.f32 %v844_v50, %v2162_v37  ;;  %v1775_v54 = vpop.f32.mrf.mxu0 }
 0x11e   : > { %v1373_v55 = vmax.f32 %v1341_v49, 0.0  ;;  %v1741_v56 = vpop.f32.mrf.mxu1 }
 0x11f   : > { %v1376_v23 = vmax.f32 %v1344_v33, 0.0  ;;  %v1342_v35 = vadd.f32 %v2182_v52, %v1303_v21  ;;  %v1308_v57 = vmul.f32 %v2177_v47, %v1269_v51  ;;  %v1267_v58 = vadd.f32 %v1176_v48, %v845_v53  ;;  %v1179_v59 = vpop.f32.mrf.mxu0 }
 0x120   : > { %1406 = vst.msk [vmem:[%s2191_s22 + $0x40] sm:$0xff] %vm1397_vm3, %v1373_v55  ;;  %v856_v60 = vadd.f32 %v1741_v56, %v2166_v39  ;;  %v847_v61 = vpop.f32.mrf.mxu1 }
 0x121   : > { %1409 = vst.msk [vmem:[%s2191_s22 + $0x58] sm:$0xff] %vm1397_vm3, %v1376_v23  ;;  %v1374_v37 = vmax.f32 %v1342_v35, 0.0  ;;  %v1347_v62 = vadd.f32 %v2182_v52, %v1308_v57  ;;  %v1306_v63 = vmul.f32 %v2177_v47, %v1267_v58  ;;  %v848_v25 = vadd.f32 %v847_v61, %v2170_v41  ;;  %v1778_v0 = vpop.f32.mrf.mxu0 }
 0x122   : > { %v1270_v1 = vadd.f32 %v1775_v54, %v856_v60  ;;  %v1744_v2 = vpop.f32.mrf.mxu1 }
 0x123   : > { %1407 = vst.msk [vmem:[%s2191_s22 + $0x48] sm:$0xff] %vm1397_vm3, %v1374_v37  ;;  %v1379_v3 = vmax.f32 %v1347_v62, 0.0  ;;  %v1345_v39 = vadd.f32 %v2182_v52, %v1306_v63  ;;  %v1268_v4 = vadd.f32 %v1179_v59, %v848_v25  ;;  %v869_v27 = vadd.f32 %v1744_v2, %v2122_v12  ;;  %v1192_v5 = vpop.f32.mrf.mxu0 }
 0x124   : > { %v1309_v6 = vmul.f32 %v2177_v47, %v1270_v1  ;;  %v860_v7 = vpop.f32.mrf.mxu1 }
 0x125   : > { %1412 = vst.msk [vmem:[%s2191_s22 + $0x70] sm:$0xff] %vm1397_vm3, %v1379_v3  ;;  %v1377_v8 = vmax.f32 %v1345_v39, 0.0  ;;  %v1307_v41 = vmul.f32 %v2177_v47, %v1268_v4  ;;  %v1273_v9 = vadd.f32 %v1778_v0, %v869_v27  ;;  %v861_v10 = vadd.f32 %v860_v7, %v2124_v14  ;;  %v1779_v11 = vpop.f32.mrf.mxu0 }
 0x126   : > { %v1348_v29 = vadd.f32 %v2182_v52, %v1309_v6  ;;  %v1745_v13 = vpop.f32.mrf.mxu1 }
 0x127   : > { %1410 = vst.msk [vmem:[%s2191_s22 + $0x60] sm:$0xff] %vm1397_vm3, %v1377_v8  ;;  %v1346_v12 = vadd.f32 %v2182_v52, %v1307_v41  ;;  %v1312_v15 = vmul.f32 %v2177_v47, %v1273_v9  ;;  %v1271_v17 = vadd.f32 %v1192_v5, %v861_v10  ;;  %v872_v43 = vadd.f32 %v1745_v13, %v2126_v16  ;;  %v1195_v44 = vpop.f32.mrf.mxu0 }
 0x128   : > { %v1380_v19 = vmax.f32 %v1348_v29, 0.0  ;;  %v863_v31 = vpop.f32.mrf.mxu1 }
 0x129   : > { %v1378_v45 = vmax.f32 %v1346_v12, 0.0  ;;  %v1351_v14 = vadd.f32 %v2182_v52, %v1312_v15  ;;  %v1310_v46 = vmul.f32 %v2177_v47, %v1271_v17  ;;  %v1274_v48 = vadd.f32 %v1779_v11, %v872_v43  ;;  %v1782_v49 = vpop.f32.mrf.mxu0 }
 0x12a   : > { %1413 = vst.msk [vmem:[%s2191_s22 + $0x78] sm:$0xff] %vm1397_vm3, %v1380_v19  ;;  %v864_v50 = vadd.f32 %v863_v31, %v2128_v18  ;;  %v1748_v33 = vpop.f32.mrf.mxu1 }
 0x12b   : > { %1411 = vst.msk [vmem:[%s2191_s22 + $0x68] sm:$0xff] %vm1397_vm3, %v1378_v45  ;;  %v1383_v16 = vmax.f32 %v1351_v14, 0.0  ;;  %v1349_v21 = vadd.f32 %v2182_v52, %v1310_v46  ;;  %v1313_v51 = vmul.f32 %v2177_v47, %v1274_v48  ;;  %v885_v53 = vadd.f32 %v1748_v33, %v2130_v20  ;;  %v1208_v54 = vpop.f32.mrf.mxu0 }
 0x12c   : > { %v1272_v55 = vadd.f32 %v1195_v44, %v864_v50  ;;  %v876_v56 = vpop.f32.mrf.mxu1 }
 0x12d   : > { %1416 = vst.msk [vmem:[%s2191_s22 + $0x90] sm:$0xff] %vm1397_vm3, %v1383_v16  ;;  %v1381_v23 = vmax.f32 %v1349_v21, 0.0  ;;  %v1352_v18 = vadd.f32 %v2182_v52, %v1313_v51  ;;  %v1277_v35 = vadd.f32 %v1782_v49, %v885_v53  ;;  %v877_v57 = vadd.f32 %v876_v56, %v2132_v22  ;;  %v1783_v58 = vpop.f32.mrf.mxu0 }
 0x12e   : > { %v1311_v59 = vmul.f32 %v2177_v47, %v1272_v55  ;;  %v1749_v60 = vpop.f32.mrf.mxu1 }
 0x12f   : > { %1414 = vst.msk [vmem:[%s2191_s22 + $0x80] sm:$0xff] %vm1397_vm3, %v1381_v23  ;;  %v1384_v61 = vmax.f32 %v1352_v18, 0.0  ;;  %v1316_v20 = vmul.f32 %v2177_v47, %v1277_v35  ;;  %v1275_v37 = vadd.f32 %v1208_v54, %v877_v57  ;;  %v888_v62 = vadd.f32 %v1749_v60, %v2136_v24  ;;  %v1211_v63 = vpop.f32.mrf.mxu0 }
 0x130   : > { %v1350_v25 = vadd.f32 %v2182_v52, %v1311_v59  ;;  %v879_v0 = vpop.f32.mrf.mxu1 }
 0x131   : > { %1417 = vst.msk [vmem:[%s2191_s22 + $0x98] sm:$0xff] %vm1397_vm3, %v1384_v61  ;;  %v1355_v22 = vadd.f32 %v2182_v52, %v1316_v20  ;;  %v1314_v1 = vmul.f32 %v2177_v47, %v1275_v37  ;;  %v1278_v2 = vadd.f32 %v1783_v58, %v888_v62  ;;  %v880_v3 = vadd.f32 %v879_v0, %v2140_v26  ;;  %v1786_v39 = vpop.f32.mrf.mxu0 }
 0x132   : > { %v1382_v4 = vmax.f32 %v1350_v25, 0.0  ;;  %v1752_v27 = vpop.f32.mrf.mxu1 }
 0x133   : > { %v1387_v5 = vmax.f32 %v1355_v22, 0.0  ;;  %v1353_v24 = vadd.f32 %v2182_v52, %v1314_v1  ;;  %v1317_v6 = vmul.f32 %v2177_v47, %v1278_v2  ;;  %v1276_v7 = vadd.f32 %v1211_v63, %v880_v3  ;;  %v1224_v8 = vpop.f32.mrf.mxu0 }
 0x134   : > { %1415 = vst.msk [vmem:[%s2191_s22 + $0x88] sm:$0xff] %vm1397_vm3, %v1382_v4  ;;  %v901_v41 = vadd.f32 %v1752_v27, %v2144_v28  ;;  %v892_v9 = vpop.f32.mrf.mxu1 }
 0x135   : > { %1420 = vst.msk [vmem:[%s2191_s22 + $0xb0] sm:$0xff] %vm1397_vm3, %v1387_v5  ;;  %v1385_v26 = vmax.f32 %v1353_v24, 0.0  ;;  %v1356_v10 = vadd.f32 %v2182_v52, %v1317_v6  ;;  %v1315_v11 = vmul.f32 %v2177_v47, %v1276_v7  ;;  %v893_v29 = vadd.f32 %v892_v9, %v2148_v30  ;;  %v1787_v13 = vpop.f32.mrf.mxu0 }
 0x136   : > { %v1281_v12 = vadd.f32 %v1786_v39, %v901_v41  ;;  %v1753_v15 = vpop.f32.mrf.mxu1 }
 0x137   : > { %1418 = vst.msk [vmem:[%s2191_s22 + $0xa0] sm:$0xff] %vm1397_vm3, %v1385_v26  ;;  %v1388_v17 = vmax.f32 %v1356_v10, 0.0  ;;  %v1354_v28 = vadd.f32 %v2182_v52, %v1315_v11  ;;  %v1279_v43 = vadd.f32 %v1224_v8, %v893_v29  ;;  %v904_v44 = vadd.f32 %v1753_v15, %v2152_v32  ;;  %v1227_v19 = vpop.f32.mrf.mxu0 }
 0x138   : > { %v1320_v31 = vmul.f32 %v2177_v47, %v1281_v12  ;;  %v895_v45 = vpop.f32.mrf.mxu1 }
 0x139   : > { %1421 = vst.msk [vmem:[%s2191_s22 + $0xb8] sm:$0xff] %vm1397_vm3, %v1388_v17  ;;  %v1386_v14 = vmax.f32 %v1354_v28, 0.0  ;;  %v1318_v30 = vmul.f32 %v2177_v47, %v1279_v43  ;;  %v1282_v46 = vadd.f32 %v1787_v13, %v904_v44  ;;  %v896_v48 = vadd.f32 %v895_v45, %v2156_v34  ;;  %v1790_v49 = vpop.f32.mrf.mxu0 }
 0x13a   : > { %v1359_v50 = vadd.f32 %v2182_v52, %v1320_v31  ;;  %v1756_v33 = vpop.f32.mrf.mxu1 }
 0x13b   : > { %1419 = vst.msk [vmem:[%s2191_s22 + $0xa8] sm:$0xff] %vm1397_vm3, %v1386_v14  ;;  %v1357_v32 = vadd.f32 %v2182_v52, %v1318_v30  ;;  %v1321_v16 = vmul.f32 %v2177_v47, %v1282_v46  ;;  %v1280_v21 = vadd.f32 %v1227_v19, %v896_v48  ;;  %v917_v51 = vadd.f32 %v1756_v33, %v2160_v36  ;;  %v1240_v53 = vpop.f32.mrf.mxu0 }
 0x13c   : > { %v1391_v54 = vmax.f32 %v1359_v50, 0.0  ;;  %v908_v55 = vpop.f32.mrf.mxu1 }
 0x13d   : > { %v1389_v34 = vmax.f32 %v1357_v32, 0.0  ;;  %v1360_v56 = vadd.f32 %v2182_v52, %v1321_v16  ;;  %v1319_v23 = vmul.f32 %v2177_v47, %v1280_v21  ;;  %v1285_v18 = vadd.f32 %v1790_v49, %v917_v51  ;;  %v1791_v58 = vpop.f32.mrf.mxu0 }
 0x13e   : > { %1424 = vst.msk [vmem:[%s2191_s22 + $0xd0] sm:$0xff] %vm1397_vm3, %v1391_v54  ;;  %v909_v35 = vadd.f32 %v908_v55, %v2164_v38  ;;  %v1757_v57 = vpop.f32.mrf.mxu1 }
 0x13f   : > { %1422 = vst.msk [vmem:[%s2191_s22 + $0xc0] sm:$0xff] %vm1397_vm3, %v1389_v34  ;;  %v1392_v36 = vmax.f32 %v1360_v56, 0.0  ;;  %v1358_v59 = vadd.f32 %v2182_v52, %v1319_v23  ;;  %v1324_v60 = vmul.f32 %v2177_v47, %v1285_v18  ;;  %v920_v61 = vadd.f32 %v1757_v57, %v2168_v40  ;;  %v1243_v22 = vpop.f32.mrf.mxu0 }
 0x140   : > { %v1283_v20 = vadd.f32 %v1240_v53, %v909_v35  ;;  %v911_v37 = vpop.f32.mrf.mxu1 }
 0x141   : > { %1425 = vst.msk [vmem:[%s2191_s22 + $0xd8] sm:$0xff] %vm1397_vm3, %v1392_v36  ;;  %v1390_v62 = vmax.f32 %v1358_v59, 0.0  ;;  %v1363_v38 = vadd.f32 %v2182_v52, %v1324_v60  ;;  %v1286_v63 = vadd.f32 %v1791_v58, %v920_v61  ;;  %v912_v25 = vadd.f32 %v911_v37, %v2172_v42 }
 0x142   : > { %v1322_v0 = vmul.f32 %v2177_v47, %v1283_v20 }
 0x143   : > { %1423 = vst.msk [vmem:[%s2191_s22 + $0xc8] sm:$0xff] %vm1397_vm3, %v1390_v62  ;;  %v1395_v1 = vmax.f32 %v1363_v38, 0.0  ;;  %v1325_v40 = vmul.f32 %v2177_v47, %v1286_v63  ;;  %v1284_v2 = vadd.f32 %v1243_v22, %v912_v25 }
 0x144   : > { %v1361_v3 = vadd.f32 %v2182_v52, %v1322_v0 }
 0x145   : > { %1428 = vst.msk [vmem:[%s2191_s22 + $0xf0] sm:$0xff] %vm1397_vm3, %v1395_v1  ;;  %v1364_v39 = vadd.f32 %v2182_v52, %v1325_v40  ;;  %v1323_v4 = vmul.f32 %v2177_v47, %v1284_v2 }
 0x146   : > { %v1393_v27 = vmax.f32 %v1361_v3, 0.0 }
 0x147   : > { %v1396_v42 = vmax.f32 %v1364_v39, 0.0  ;;  %v1362_v5 = vadd.f32 %v2182_v52, %v1323_v4 }
 0x148   : > { %1426 = vst.msk [vmem:[%s2191_s22 + $0xe0] sm:$0xff] %vm1397_vm3, %v1393_v27 }
 0x149   : > { %1429 = vst.msk [vmem:[%s2191_s22 + $0xf8] sm:$0xff] %vm1397_vm3, %v1396_v42  ;;  %v1394_v24 = vmax.f32 %v1362_v5, 0.0 }
 0x14b   : > { %1427 = vst.msk [vmem:[%s2191_s22 + $0xe8] sm:$0xff] %vm1397_vm3, %v1394_v24 }
 0x14c PF: > { %s15_s20 = sadd.s32 1, %s1883_s20   ;;  %s2359_s18 = smov %s1879_s19 }
 0x14d   : > { %p12_p5 = scmp.ge.s32.totalorder %s15_s20, 4   ;;  %s2360_s19 = smov %s2362_s21 }
 0x14f   :  { %14 = sbr.rel (!%p12_p5) target bundleno = 2 (0x2), region = 75 }

</bundles_post_ra>
